<compile_context>
chip_gen: v5e
topology: v5e:2x2
jax: 0.10.0
libtpu: 0.0.40
codegen_flags: <defaults>
</compile_context>

<pallas_src>
import jax
import jax.numpy as jnp
from jax.experimental import pallas as pl
from jax.experimental.pallas import tpu as pltpu

_FLAT = 28 * 28            # 784
_MAX_LANE_COLS = 2048      # widest lane-dense column count we consider (multiple of 128)
_MIN_CHUNK_BYTES = 1 << 20 # target >= 1 MiB per DMA chunk before splitting
_MAX_CHUNKS = 8            # cap on concurrent DMA chunks


def _pick_cols(total):
    """Widest multiple of 128 (<= cap) that divides total, or None."""
    c = _MAX_LANE_COLS
    while c >= 128:
        if total % c == 0:
            return c
        c -= 128
    return None


def _chunk_bounds(rows, row_bytes):
    """Static (start, size) row ranges; ~equal chunks of >= _MIN_CHUNK_BYTES."""
    total_bytes = rows * row_bytes
    nchunks = max(1, min(_MAX_CHUNKS, rows, total_bytes // _MIN_CHUNK_BYTES))
    base, rem = divmod(rows, nchunks)
    bounds, start = [], 0
    for i in range(nchunks):
        size = base + (1 if i < rem else 0)
        bounds.append((start, size))
        start += size
    return tuple(bounds)


def _dma_copy(slab):
    """HBM->HBM async-DMA materialization of a 2-D slab (identity copy)."""
    rows, cols = slab.shape
    itemsize = jnp.dtype(slab.dtype).itemsize
    bounds = _chunk_bounds(rows, cols * itemsize)
    nchunks = len(bounds)
    nbytes = rows * cols * itemsize

    def kernel(x_hbm, o_hbm, sem):
        copies = []
        for i, (start, size) in enumerate(bounds):
            if size == rows:                     # whole-array copy, no slicing
                src, dst = x_hbm, o_hbm
            else:                                # static row-range chunk
                src = x_hbm.at[pl.ds(start, size)]
                dst = o_hbm.at[pl.ds(start, size)]
            cp = pltpu.make_async_copy(src, dst, sem.at[i])
            cp.start()                           # issue all DMAs first ...
            copies.append(cp)
        for cp in copies:                        # ... then wait on all of them
            cp.wait()

    return pl.pallas_call(
        kernel,
        out_shape=jax.ShapeDtypeStruct((rows, cols), slab.dtype),
        in_specs=[pl.BlockSpec(memory_space=pl.ANY)],
        out_specs=pl.BlockSpec(memory_space=pl.ANY),
        scratch_shapes=[pltpu.SemaphoreType.DMA((nchunks,))],
        compiler_params=pltpu.CompilerParams(has_side_effects=True),
        cost_estimate=pl.CostEstimate(
            flops=0, transcendentals=0, bytes_accessed=2 * nbytes),
    )(slab)


def reshape_module_forward(x):
    """Equivalent of torch `x.view(-1, 28*28)` for contiguous NCHW input."""
    total = 1
    for d in x.shape:
        total *= d
    assert total % _FLAT == 0, "x.view(-1, 784) requires numel % 784 == 0"
    b = total // _FLAT

    # Metadata-only row-major collapse (this *is* the .view semantics).
    flat = jnp.reshape(x, (b, _FLAT))

    cols = _pick_cols(total)
    if cols is not None:
        # Wide lane-dense layout: long contiguous DMA rows.
        slab = jnp.reshape(flat, (total // cols, cols))
        out = _dma_copy(slab)
        return jnp.reshape(out, (b, _FLAT))
    # Fallback: DMA the (B, 784) slab as-is (shape is irrelevant to the DMA,
    # no core loads/stores are involved).
    return _dma_copy(flat)


if __name__ == "__main__":
    # reshape_module has no parameters, so nothing to initialize.
    key = jax.random.PRNGKey(0)
    B, C, H, W = 2, 1, 28, 28            # MNIST-style NCHW input
    x = jax.random.normal(key, (B, C, H, W), dtype=jnp.float32)

    out = reshape_module_forward(x)
    out = jax.block_until_ready(out)

    # Sanity check against the pure-JAX reference of torch's .view(-1, 784).
    ref = jnp.reshape(x, (-1, _FLAT))
    assert out.shape == (B, _FLAT), out.shape
    assert out.dtype == x.dtype, out.dtype
    assert bool(jnp.array_equal(out, ref)), "kernel output mismatch vs reference"

    print("KERNEL_OK")
</pallas_src>

<mosaic_0001>
module attributes {stable_mosaic.version = 11 : i64} {
  func.func @kernel(%arg0: memref<2x784xf32, #tpu.memory_space<any>>, %arg1: memref<2x784xf32, #tpu.memory_space<any>>, %arg2: memref<1x!tpu.dma_semaphore, #tpu.memory_space<semaphore_mem>>) attributes {dimension_semantics = [], scalar_prefetch = 0 : i64, scratch_operands = 1 : i64, tpu.core_type = #tpu.core_type<tc>} {
    %c0_i32 = arith.constant 0 : i32
    %0 = tpu.memref_slice %arg2[%c0_i32] : memref<1x!tpu.dma_semaphore, #tpu.memory_space<semaphore_mem>> -> memref<1x!tpu.dma_semaphore, #tpu.memory_space<semaphore_mem>>
    %1 = tpu.memref_squeeze %0 : memref<1x!tpu.dma_semaphore, #tpu.memory_space<semaphore_mem>> -> memref<!tpu.dma_semaphore, #tpu.memory_space<semaphore_mem>>
    tpu.enqueue_dma source(%arg0 : memref<2x784xf32, #tpu.memory_space<any>>) target(%arg1 : memref<2x784xf32, #tpu.memory_space<any>>) target_semaphore(%1 : memref<!tpu.dma_semaphore, #tpu.memory_space<semaphore_mem>>)
    %c0_i32_0 = arith.constant 0 : i32
    %2 = tpu.memref_slice %arg2[%c0_i32_0] : memref<1x!tpu.dma_semaphore, #tpu.memory_space<semaphore_mem>> -> memref<1x!tpu.dma_semaphore, #tpu.memory_space<semaphore_mem>>
    %3 = tpu.memref_squeeze %2 : memref<1x!tpu.dma_semaphore, #tpu.memory_space<semaphore_mem>> -> memref<!tpu.dma_semaphore, #tpu.memory_space<semaphore_mem>>
    tpu.wait_dma2 semaphore(%3 : memref<!tpu.dma_semaphore, #tpu.memory_space<semaphore_mem>>) src(%arg0 : memref<2x784xf32, #tpu.memory_space<any>>) dst(%arg1 : memref<2x784xf32, #tpu.memory_space<any>>)
    return
  }
}

</mosaic_0001>

<bundles_post_ra>
// kernel: tpu_custom_call.1
= control target key start
LH: loop header
LB: loop body
LE: loop exit
PB: predicated region body
PF: predicated region fallthrough
CT: control target
= control target key end

     0   :  { %s33_s12 = smov [#allocation2]   ;;  %s34_s13 = smov [#allocation3]   ;;  %s52_s0 = inlined_call_operand.hbm [shape: f32[2,784], index: 0, kind: input, shape index: {}]   ;;  %s53_s1 = inlined_call_operand.hbm [shape: f32[2,784], index: 1, kind: output, shape index: {}]  }
   0x1   :  { %s10_s8 = sshll.u32 %s52_s0, 4  ;;  %s12_s11 = sshll.u32 %s53_s1, 4  ;;  %s11_s8 = int_to_ptr.hbm [resolvable:$true] %s10_s8  ;;  %s13_s11 = int_to_ptr.hbm [resolvable:$true] %s12_s11 }
   0x2   :  { %s35_s14 = smov 0  }
   0x3   :  { %16 = dma.general %s11_s8, 224, %s13_s11, %s33_s12, %s34_s13, [#allocation4], %s35_s14, 0  }
   0x4   :  { %31 = dma.done.wait [#allocation2], 224 }
   0x5   :  { %32 = vsyncadd [#allocation2], 4294967072 }
   0x6   :  { %21 = vsyncmov [#allocation2] }
   0x9   :  { %s22_s15 = vpop.sfrf %21 }
   0xa   :  { %p27_p0 = scmp.ne.s32.totalorder %s22_s15, 0 }
   0xc   :  { %26 = shalt.err (%p27_p0)  }

</bundles_post_ra>
